<compile_context>
chip_gen: v7x
topology: tpu7x:2x2x1
jax: 0.10.0
libtpu: 0.0.40
codegen_flags: <defaults>
</compile_context>

<pallas_src>
import functools
import math

import jax
import jax.numpy as jnp
from jax.experimental import pallas as pl
from jax.experimental.pallas import tpu as pltpu


# ----------------------------------------------------------------------------
# One-time parameter preparation (hoisted out of the per-step call).
# ----------------------------------------------------------------------------
def prepare_params(weight_ih, weight_hh, topic_w_i, topic_w_f, *, dtype=None):
    """Pack PyTorch-layout weights into fused, pre-transposed (in, out) matrices.

    weight_ih: (4H, I), weight_hh: (4H, H), topic_w_i/f: (H, T).
    Returns dict with:
      w_full : (I+H+T, 4H)  -- for the single-step cell (one fused matmul)
      w_x    : (I, 4H), w_h: (H, 4H), w_t: (T, 4H) -- for the sequence kernel
    """
    four_h, input_size = weight_ih.shape
    hidden_size = four_h // 4
    topic_size = topic_w_i.shape[1]
    if dtype is None:
        dtype = weight_ih.dtype

    w_x = jnp.transpose(weight_ih).astype(dtype)          # (I, 4H)
    w_h = jnp.transpose(weight_hh).astype(dtype)          # (H, 4H)
    # Topic weights only feed the i and f gates; zero-pad the g/o columns so the
    # topic contribution rides in the same fused (.., 4H) matmul.
    w_t = jnp.zeros((topic_size, 4 * hidden_size), dtype)
    w_t = w_t.at[:, 0:hidden_size].set(jnp.transpose(topic_w_i).astype(dtype))
    w_t = w_t.at[:, hidden_size:2 * hidden_size].set(jnp.transpose(topic_w_f).astype(dtype))

    w_full = jnp.concatenate([w_x, w_h, w_t], axis=0)      # (I+H+T, 4H)
    return {
        "w_full": w_full, "w_x": w_x, "w_h": w_h, "w_t": w_t,
        "input_size": int(input_size), "hidden_size": int(hidden_size),
        "topic_size": int(topic_size),
    }


def _pick_batch_tile(batch, max_tile=256):
    if batch <= max_tile:
        return batch
    for cand in (max_tile, 128, 64, 32, 16, 8):
        if batch % cand == 0:
            return cand
    return batch


# ----------------------------------------------------------------------------
# Single-step cell kernel: one fused lane-dense matmul per step.
# ----------------------------------------------------------------------------
def _cell_kernel(z_ref, c_ref, w_ref, hy_ref, cy_ref, *, hidden_size):
    h = hidden_size
    # Matmul operands in the weight dtype (bf16 on v6e/v7x), accumulate in f32.
    z = z_ref[...].astype(w_ref.dtype)
    gates = jnp.dot(z, w_ref[...], preferred_element_type=jnp.float32)  # (Bt, 4H)

    c = c_ref[...].astype(jnp.float32)
    ingate = jax.nn.sigmoid(gates[:, 0 * h:1 * h])
    forgetgate = jax.nn.sigmoid(gates[:, 1 * h:2 * h])
    cellgate = jnp.tanh(gates[:, 2 * h:3 * h])
    outgate = jax.nn.sigmoid(gates[:, 3 * h:4 * h])

    cy = forgetgate * c + ingate * cellgate
    hy = outgate * jnp.tanh(cy)

    hy_ref[...] = hy.astype(hy_ref.dtype)
    cy_ref[...] = cy.astype(cy_ref.dtype)


def lstm_ke_cell(params, x, topic, hx, cx, *, batch_tile=None):
    """Single LSTMKECell step. x:(B,I), topic:(B,T), hx/cx:(B,H) -> (hy, cy)."""
    batch, input_size = x.shape
    hidden_size = params["hidden_size"]
    topic_size = params["topic_size"]
    assert input_size == params["input_size"]
    w_full = params["w_full"]
    k_dim = input_size + hidden_size + topic_size

    # Per-call glue is only this small activation concat (weights are pre-packed).
    z = jnp.concatenate([x, hx, topic], axis=1)            # (B, I+H+T)

    bt = batch_tile or _pick_batch_tile(batch)
    if batch % bt != 0:
        bt = batch
    nb = batch // bt

    kernel = functools.partial(_cell_kernel, hidden_size=hidden_size)
    # NOTE: for large H/I (e.g. H=I=1024) keep weights bf16 and/or raise
    # pltpu.CompilerParams(vmem_limit_bytes=...) — v7x has only 64 MiB VMEM/TC.
    hy, cy = pl.pallas_call(
        kernel,
        out_shape=(jax.ShapeDtypeStruct((batch, hidden_size), hx.dtype),
                   jax.ShapeDtypeStruct((batch, hidden_size), cx.dtype)),
        grid=(nb,),
        in_specs=[
            pl.BlockSpec((bt, k_dim), lambda b: (b, 0)),
            pl.BlockSpec((bt, hidden_size), lambda b: (b, 0)),
            pl.BlockSpec((k_dim, 4 * hidden_size), lambda b: (0, 0)),  # resident
        ],
        out_specs=(
            pl.BlockSpec((bt, hidden_size), lambda b: (b, 0)),
            pl.BlockSpec((bt, hidden_size), lambda b: (b, 0)),
        ),
        input_output_aliases={1: 1},   # cx buffer reused for cy (in-place state)
        compiler_params=pltpu.CompilerParams(dimension_semantics=("parallel",)),
    )(z, cx, w_full)
    return hy, cy


# ----------------------------------------------------------------------------
# Sequence kernel: entire time loop inside one pallas_call.
#   grid = (batch_tiles [parallel], seq_len [arbitrary])
#   weights + topic-gate contribution resident in VMEM; h/c carried in scratch.
# ----------------------------------------------------------------------------
def _seq_kernel(x_ref, topic_ref, h0_ref, c0_ref, wx_ref, wh_ref, wt_ref,
                y_ref, hn_ref, cn_ref,
                h_scr, c_scr, tg_scr, *, hidden_size):
    h = hidden_size
    t = pl.program_id(1)

    @pl.when(t == 0)
    def _init():
        h_scr[...] = h0_ref[...].astype(jnp.float32)
        c_scr[...] = c0_ref[...].astype(jnp.float32)
        # Topic is constant across time: compute its gate contribution once per
        # batch tile and keep it resident in VMEM scratch.
        tg_scr[...] = jnp.dot(topic_ref[...].astype(wt_ref.dtype), wt_ref[...],
                              preferred_element_type=jnp.float32)

    x_t = x_ref[0].astype(wx_ref.dtype)                    # (Bt, I)
    h_prev = h_scr[...].astype(wh_ref.dtype)               # (Bt, H)
    gates = (jnp.dot(x_t, wx_ref[...], preferred_element_type=jnp.float32)
             + jnp.dot(h_prev, wh_ref[...], preferred_element_type=jnp.float32)
             + tg_scr[...])                                # (Bt, 4H)

    ingate = jax.nn.sigmoid(gates[:, 0 * h:1 * h])
    forgetgate = jax.nn.sigmoid(gates[:, 1 * h:2 * h])
    cellgate = jnp.tanh(gates[:, 2 * h:3 * h])
    outgate = jax.nn.sigmoid(gates[:, 3 * h:4 * h])

    cy = forgetgate * c_scr[...] + ingate * cellgate
    hy = outgate * jnp.tanh(cy)

    h_scr[...] = hy
    c_scr[...] = cy
    y_ref[0] = hy.astype(y_ref.dtype)

    @pl.when(t == pl.num_programs(1) - 1)
    def _final():
        hn_ref[...] = hy.astype(hn_ref.dtype)
        cn_ref[...] = cy.astype(cn_ref.dtype)


def lstm_ke_sequence(params, x_seq, topic, h0, c0, *, batch_tile=None):
    """Run the cell over a sequence inside one kernel.

    x_seq: (S, B, I), topic: (B, T) (fixed per sequence), h0/c0: (B, H).
    Returns (y_seq (S,B,H), (h_S, c_S)).
    """
    seq_len, batch, input_size = x_seq.shape
    hidden_size = params["hidden_size"]
    topic_size = params["topic_size"]
    w_x, w_h, w_t = params["w_x"], params["w_h"], params["w_t"]

    bt = batch_tile or _pick_batch_tile(batch)
    if batch % bt != 0:
        bt = batch
    nb = batch // bt

    kernel = functools.partial(_seq_kernel, hidden_size=hidden_size)
    y_seq, h_n, c_n = pl.pallas_call(
        kernel,
        out_shape=(jax.ShapeDtypeStruct((seq_len, batch, hidden_size), h0.dtype),
                   jax.ShapeDtypeStruct((batch, hidden_size), h0.dtype),
                   jax.ShapeDtypeStruct((batch, hidden_size), c0.dtype)),
        grid=(nb, seq_len),
        in_specs=[
            pl.BlockSpec((1, bt, input_size), lambda b, t: (t, b, 0)),   # streamed x_t
            pl.BlockSpec((bt, topic_size), lambda b, t: (b, 0)),          # resident
            pl.BlockSpec((bt, hidden_size), lambda b, t: (b, 0)),
            pl.BlockSpec((bt, hidden_size), lambda b, t: (b, 0)),
            pl.BlockSpec((input_size, 4 * hidden_size), lambda b, t: (0, 0)),
            pl.BlockSpec((hidden_size, 4 * hidden_size), lambda b, t: (0, 0)),
            pl.BlockSpec((topic_size, 4 * hidden_size), lambda b, t: (0, 0)),
        ],
        out_specs=(
            pl.BlockSpec((1, bt, hidden_size), lambda b, t: (t, b, 0)),
            pl.BlockSpec((bt, hidden_size), lambda b, t: (b, 0)),
            pl.BlockSpec((bt, hidden_size), lambda b, t: (b, 0)),
        ),
        scratch_shapes=[
            pltpu.VMEM((bt, hidden_size), jnp.float32),        # h carry
            pltpu.VMEM((bt, hidden_size), jnp.float32),        # c carry
            pltpu.VMEM((bt, 4 * hidden_size), jnp.float32),    # topic gate contrib
        ],
        compiler_params=pltpu.CompilerParams(
            dimension_semantics=("parallel", "arbitrary")),
    )(x_seq, topic, h0, c0, w_x, w_h, w_t)
    return y_seq, (h_n, c_n)


# ----------------------------------------------------------------------------
# Pure-JAX reference (mirrors LSTMtopicCell_func with bias=None, drop=identity).
# ----------------------------------------------------------------------------
def _reference_cell(x, topic, hx, cx, weight_ih, weight_hh, topic_w_i, topic_w_f):
    gates = x @ weight_ih.T + hx @ weight_hh.T
    hidden = hx.shape[1]
    ig, fg, gg, og = (gates[:, k * hidden:(k + 1) * hidden] for k in range(4))
    i = jax.nn.sigmoid(ig + topic @ topic_w_i.T)
    f = jax.nn.sigmoid(fg + topic @ topic_w_f.T)
    g = jnp.tanh(gg)
    o = jax.nn.sigmoid(og)
    cy = f * cx + i * g
    hy = o * jnp.tanh(cy)
    return hy, cy


if __name__ == "__main__":
    B, I, H, T, S = 8, 32, 32, 16, 8

    key = jax.random.PRNGKey(0)
    ks = jax.random.split(key, 9)
    x = jax.random.normal(ks[0], (B, I), dtype=jnp.float32)
    topic = jax.random.normal(ks[1], (B, T), dtype=jnp.float32)
    hx = jax.random.normal(ks[2], (B, H), dtype=jnp.float32)
    cx = jax.random.normal(ks[3], (B, H), dtype=jnp.float32)
    x_seq = jax.random.normal(ks[8], (S, B, I), dtype=jnp.float32)

    # reset_parameters(): U(-stdv, stdv), stdv = 1/sqrt(hidden_size); bias=False.
    stdv = 1.0 / math.sqrt(H)
    weight_ih = jax.random.uniform(ks[4], (4 * H, I), jnp.float32, -stdv, stdv)
    weight_hh = jax.random.uniform(ks[5], (4 * H, H), jnp.float32, -stdv, stdv)
    topic_w_i = jax.random.uniform(ks[6], (H, T), jnp.float32, -stdv, stdv)
    topic_w_f = jax.random.uniform(ks[7], (H, T), jnp.float32, -stdv, stdv)

    # Weight packing done once (hoisted out of the per-step call path).
    params = prepare_params(weight_ih, weight_hh, topic_w_i, topic_w_f)

    # --- 1) single-step cell (f32 weights) -----------------------------------
    hy, cy = lstm_ke_cell(params, x, topic, hx, cx)
    jax.block_until_ready((hy, cy))
    hy_ref, cy_ref = _reference_cell(x, topic, hx, cx,
                                     weight_ih, weight_hh, topic_w_i, topic_w_f)
    assert hy.shape == (B, H) and cy.shape == (B, H)
    assert jnp.allclose(hy, hy_ref, atol=1e-4, rtol=1e-4)
    assert jnp.allclose(cy, cy_ref, atol=1e-4, rtol=1e-4)

    # --- 2) full sequence inside one pallas_call ------------------------------
    y_seq, (h_n, c_n) = lstm_ke_sequence(params, x_seq, topic, hx, cx)
    jax.block_until_ready((y_seq, h_n, c_n))
    h_r, c_r = hx, cx
    ys = []
    for s in range(S):
        h_r, c_r = _reference_cell(x_seq[s], topic, h_r, c_r,
                                   weight_ih, weight_hh, topic_w_i, topic_w_f)
        ys.append(h_r)
    y_ref = jnp.stack(ys, axis=0)
    assert jnp.allclose(y_seq, y_ref, atol=1e-3, rtol=1e-3)
    assert jnp.allclose(h_n, h_r, atol=1e-3, rtol=1e-3)
    assert jnp.allclose(c_n, c_r, atol=1e-3, rtol=1e-3)

    # --- 3) bf16 weights (v6e/v7x MXU path), f32 state & gate math -------------
    params_bf16 = prepare_params(weight_ih, weight_hh, topic_w_i, topic_w_f,
                                 dtype=jnp.bfloat16)
    hy16, cy16 = lstm_ke_cell(params_bf16, x, topic, hx, cx)
    jax.block_until_ready((hy16, cy16))
    assert jnp.allclose(hy16, hy_ref, atol=1e-1, rtol=1e-1)
    assert jnp.allclose(cy16, cy_ref, atol=1e-1, rtol=1e-1)

    print("KERNEL_OK")
</pallas_src>

<mosaic_0001>
module attributes {stable_mosaic.version = 11 : i64} {
  func.func @_cell_kernel(%arg0: i32, %arg1: memref<8x80xf32, #tpu.memory_space<vmem>>, %arg2: memref<8x32xf32, #tpu.memory_space<vmem>>, %arg3: memref<80x128xf32, #tpu.memory_space<vmem>>, %arg4: memref<8x32xf32, #tpu.memory_space<vmem>>, %arg5: memref<8x32xf32, #tpu.memory_space<vmem>>) attributes {dimension_semantics = [#tpu.dimension_semantics<parallel>], iteration_bounds = array<i64: 1>, scalar_prefetch = 0 : i64, scratch_operands = 0 : i64, tpu.core_type = #tpu.core_type<tc>, window_params = [{transform_indices = @transform_0, window_bounds = array<i64: 8, 80>}, {transform_indices = @transform_1, window_bounds = array<i64: 8, 32>}, {pipeline_mode = #tpu.pipeline_mode<synchronous>, transform_indices = @transform_2, window_bounds = array<i64: 80, 128>}, {transform_indices = @transform_3, window_bounds = array<i64: 8, 32>}, {transform_indices = @transform_4, window_bounds = array<i64: 8, 32>}]} {
    %c0 = arith.constant 0 : index
    %c0_0 = arith.constant 0 : index
    %0 = vector.load %arg1[%c0, %c0_0] : memref<8x80xf32, #tpu.memory_space<vmem>>, vector<8x80xf32>
    %c0_1 = arith.constant 0 : index
    %c0_2 = arith.constant 0 : index
    %1 = vector.load %arg3[%c0_1, %c0_2] : memref<80x128xf32, #tpu.memory_space<vmem>>, vector<80x128xf32>
    %cst = arith.constant dense<0.000000e+00> : vector<8x128xf32>
    %2 = tpu.matmul %0, %1, %cst {dimension_numbers = #tpu.dot_dimension_numbers<[1], [0], [0], [1], [0, 0, 1, 1], [], []>} : vector<8x80xf32>, vector<80x128xf32>, vector<8x128xf32> -> vector<8x128xf32>
    %c0_3 = arith.constant 0 : index
    %c0_4 = arith.constant 0 : index
    %3 = vector.load %arg2[%c0_3, %c0_4] : memref<8x32xf32, #tpu.memory_space<vmem>>, vector<8x32xf32>
    %4 = vector.extract_strided_slice %2 {offsets = [0, 0], sizes = [8, 32], strides = [1, 1]} : vector<8x128xf32> to vector<8x32xf32>
    %5 = arith.negf %4 : vector<8x32xf32>
    %6 = math.exp %5 : vector<8x32xf32>
    %cst_5 = arith.constant 1.000000e+00 : f32
    %7 = vector.broadcast %cst_5 : f32 to vector<8x32xf32>
    %8 = arith.addf %7, %6 : vector<8x32xf32>
    %9 = arith.divf %7, %8 : vector<8x32xf32>
    %10 = vector.extract_strided_slice %2 {offsets = [0, 32], sizes = [8, 32], strides = [1, 1]} : vector<8x128xf32> to vector<8x32xf32>
    %11 = arith.negf %10 : vector<8x32xf32>
    %12 = math.exp %11 : vector<8x32xf32>
    %cst_6 = arith.constant 1.000000e+00 : f32
    %13 = vector.broadcast %cst_6 : f32 to vector<8x32xf32>
    %14 = arith.addf %13, %12 : vector<8x32xf32>
    %15 = arith.divf %13, %14 : vector<8x32xf32>
    %16 = vector.extract_strided_slice %2 {offsets = [0, 64], sizes = [8, 32], strides = [1, 1]} : vector<8x128xf32> to vector<8x32xf32>
    %17 = math.tanh %16 : vector<8x32xf32>
    %18 = vector.extract_strided_slice %2 {offsets = [0, 96], sizes = [8, 32], strides = [1, 1]} : vector<8x128xf32> to vector<8x32xf32>
    %19 = arith.negf %18 : vector<8x32xf32>
    %20 = math.exp %19 : vector<8x32xf32>
    %cst_7 = arith.constant 1.000000e+00 : f32
    %21 = vector.broadcast %cst_7 : f32 to vector<8x32xf32>
    %22 = arith.addf %21, %20 : vector<8x32xf32>
    %23 = arith.divf %21, %22 : vector<8x32xf32>
    %24 = arith.mulf %15, %3 : vector<8x32xf32>
    %25 = arith.mulf %9, %17 : vector<8x32xf32>
    %26 = arith.addf %24, %25 : vector<8x32xf32>
    %27 = math.tanh %26 : vector<8x32xf32>
    %28 = arith.mulf %23, %27 : vector<8x32xf32>
    %c0_8 = arith.constant 0 : index
    %c0_9 = arith.constant 0 : index
    %29 = vector.load %arg4[%c0_8, %c0_9] : memref<8x32xf32, #tpu.memory_space<vmem>>, vector<8x32xf32>
    tpu.vector_store %arg4[%c0_8, %c0_9], %28 {strides = array<i32>} : memref<8x32xf32, #tpu.memory_space<vmem>>, vector<8x32xf32>,
    %c0_10 = arith.constant 0 : index
    %c0_11 = arith.constant 0 : index
    %30 = vector.load %arg5[%c0_10, %c0_11] : memref<8x32xf32, #tpu.memory_space<vmem>>, vector<8x32xf32>
    tpu.vector_store %arg5[%c0_10, %c0_11], %26 {strides = array<i32>} : memref<8x32xf32, #tpu.memory_space<vmem>>, vector<8x32xf32>,
    return
  }
  func.func @transform_0(%arg0: i32) -> (i32, i32) {
    %c0_i32 = arith.constant 0 : i32
    %c0_i32_0 = arith.constant 0 : i32
    return %arg0, %c0_i32 : i32, i32
  }
  func.func @transform_1(%arg0: i32) -> (i32, i32) {
    %c0_i32 = arith.constant 0 : i32
    %c0_i32_0 = arith.constant 0 : i32
    return %arg0, %c0_i32 : i32, i32
  }
  func.func @transform_2(%arg0: i32) -> (i32, i32) {
    %c0_i32 = arith.constant 0 : i32
    %c0_i32_0 = arith.constant 0 : i32
    %c0_i32_1 = arith.constant 0 : i32
    return %c0_i32, %c0_i32_0 : i32, i32
  }
  func.func @transform_3(%arg0: i32) -> (i32, i32) {
    %c0_i32 = arith.constant 0 : i32
    %c0_i32_0 = arith.constant 0 : i32
    return %arg0, %c0_i32 : i32, i32
  }
  func.func @transform_4(%arg0: i32) -> (i32, i32) {
    %c0_i32 = arith.constant 0 : i32
    %c0_i32_0 = arith.constant 0 : i32
    return %arg0, %c0_i32 : i32, i32
  }
}

</mosaic_0001>

<bundles_post_ra>
// kernel: tpu_custom_call.1
= control target key start
LH: loop header
LB: loop body
LE: loop exit
PB: predicated region body
PF: predicated region fallthrough
CT: control target
= control target key end

     0   :  { %10 = vsyncpa [#allocation3], 0  ;;  %s463_s0 = inlined_call_operand.vmem [shape: f32[8,80], index: 0, kind: input, shape index: {}]   ;;  %s464_s1 = inlined_call_operand.hbm [shape: f32[8,32], index: 1, kind: input, shape index: {}, may-alias: {1,4}]   ;;  %s465_s2 = inlined_call_operand.hbm [shape: f32[80,128], index: 2, kind: input, shape index: {}]   ;;  %s466_s3 = inlined_call_operand.hbm [shape: f32[8,32], index: 3, kind: output, shape index: {0}]   ;;  %s467_s4 = inlined_call_operand.hbm [shape: f32[8,32], index: 4, kind: output, shape index: {1}, may-alias: {1,4}]  }
   0x1   :  { %11 = vsyncpa [#allocation6], 0 }
   0x2   :  { %12 = vsyncpa [#allocation4], 0 }
   0x3   :  { %13 = vsyncpa [#allocation9], 0  ;;  %s366_s15 = smov [#allocation2]   ;;  %s367_s17 = smov [#allocation5]  }
   0x4   :  { %s22_s16 = sshll.u32 %s366_s15, 4  ;;  %s31_s18 = sshll.u32 %s367_s17, 4  ;;  %s23_s16 = int_to_ptr.vmem [resolvable:$true] %s22_s16  ;;  %s403_s18 = int_to_ptr.vmem [resolvable:$true] %s31_s18 }
   0x5   :  { %s270_s21 = scalar_lea.hbm %s464_s1, 128 }
   0x6   :  { %p271_p0 = scmp.ne.s32.totalorder %s464_s1, %s270_s21  ;;  %p274_p1 = scmp.lt.u32.totalorder %s270_s21, %s464_s1 }
   0x8   :  { %p276_p2 = pnand %p274_p1, %p271_p0 }
   0xa   :  { %279 = shalt.err (!%p276_p2)
}
   0xb   :  { %s280_s26 = scalar_lea.vmem %s23_s16, 128  ;;  %p285_p4 = scmp.lt.s32.totalorder %s23_s16, %s23_s16 }
   0xc   :  { %p281_p3 = scmp.ne.s32.totalorder %s23_s16, %s280_s26  ;;  %p286_p5 = scmp.lt.s32.totalorder %s280_s26, %s280_s26 }
   0xe   :  { %p287_p6 = por %p286_p5, %p285_p4 }
  0x10   :  { %p288_p7 = pnand %p287_p6, %p281_p3 }
  0x12   :  { %291 = shalt.err (!%p288_p7)
}
  0x13   :  { %25 = dma.hbm_to_vmem [thread:$0]  %s464_s1, 128, %s23_s16, [#allocation3]  }
  0x14   :  { %s292_s5 = scalar_lea.hbm %s465_s2, 1280 }
  0x15   :  { %p293_p8 = scmp.ne.s32.totalorder %s465_s2, %s292_s5  ;;  %p296_p9 = scmp.lt.u32.totalorder %s292_s5, %s465_s2 }
  0x17   :  { %p298_p10 = pnand %p296_p9, %p293_p8 }
  0x19   :  { %301 = shalt.err (!%p298_p10)
}
  0x1a   :  { %s302_s10 = scalar_lea.vmem %s403_s18, 1280  ;;  %p307_p12 = scmp.lt.s32.totalorder %s403_s18, %s403_s18 }
  0x1b   :  { %p303_p11 = scmp.ne.s32.totalorder %s403_s18, %s302_s10  ;;  %p308_p13 = scmp.lt.s32.totalorder %s302_s10, %s302_s10 }
  0x1d   :  { %p309_p0 = por %p308_p13, %p307_p12 }
  0x1f   :  { %p310_p1 = pnand %p309_p0, %p303_p11 }
  0x21   :  { %313 = shalt.err (!%p310_p1)
}
  0x22   :  { %s368_s1 = smov 128   ;;  %s369_s11 = smov 8  }
  0x23   :  { %37 = dma.hbm_to_vmem [thread:$0]  %s465_s2, 1280, %s403_s18, [#allocation6], %s368_s1, %s368_s1, %s369_s11  }
  0x24   :  { %358 = dma.done.wait [#allocation3], 128  }
  0x25   :  { %359 = vsyncadd [#allocation3], 4294967168 }
  0x26   :  { %360 = dma.done.wait [#allocation6], 1280  }
  0x27   :  { %361 = vsyncadd [#allocation6], 4294966016  ;;  %v370_v0 = vmov 0.0|0.0   ;;  %vm371_vm0 = vmmov 0   ;;  %v372_v1 = vmov 0.0   ;;  %v45_v2 = vld [vmem:[#allocation5] sm:$0xff] }
  0x28   :  { %235 = vmatprep.subr.bf16.mxu0 %v370_v0  ;;  %232 = vmatprep.mubr.msk.f32.mxu0 %vm371_vm0, %v372_v1  ;;  %v46_v3 = vld [vmem:[#allocation5 + $0x8] sm:$0xff]  ;;  %v47_v4 = vld [vmem:[#allocation5 + $0x10] sm:$0xff]  ;;  %v48_v6 = vld [vmem:[#allocation5 + $0x18] sm:$0xff]  ;;  %vm55_vm1 = vcmask 654336   ;;  %s373_s15 = smov 64   ;;  %s374_s16 = smov 32  }
  0x29   :  { %v236_v5 = vpack.c.bf16 %v46_v3, %v45_v2  ;;  %v239_v7 = vpack.c.bf16 %v48_v6, %v47_v4  ;;  %v49_v8 = vld [vmem:[#allocation5 + $0x20] sm:$0xff]  ;;  %v50_v9 = vld [vmem:[#allocation5 + $0x28] sm:$0xff]  ;;  %v51_v11 = vld [vmem:[#allocation5 + $0x30] sm:$0xff]  ;;  %s376_s17 = smov [#allocation8]   ;;  %vm162_vm2 = vcmask 261120  }
  0x2a   :  { %v242_v10 = vpack.c.bf16 %v50_v9, %v49_v8  ;;  %v52_v12 = vld [vmem:[#allocation5 + $0x38] sm:$0xff]  ;;  %v53_v14 = vld [vmem:[#allocation5 + $0x40] sm:$0xff]  ;;  %v54_v15 = vld [vmem:[#allocation5 + $0x48] sm:$0xff]  ;;  %s185_s18 = sshll.u32 %s376_s17, 4  ;;  %s186_s18 = int_to_ptr.vmem [resolvable:$true] %s185_s18 }
  0x2b   :  { %237 = vmatpush3.bf16.msra.mxu0 %v236_v5  ;;  %v245_v13 = vpack.c.bf16 %v52_v12, %v51_v11  ;;  %v248_v16 = vpack.c.bf16 %v54_v15, %v53_v14  ;;  %v44_v17 = vld [vmem:[%s463_s0] sm:$0xff]  ;;  %s375_s0 = smov 96   ;;  %s314_s19 = scalar_lea.vmem %s186_s18, 128 }
  0x2c   :  { %238 = vmatprep.subr.bf16.mxu0 %v370_v0  ;;  %v129_v21 = vld [vmem:[#allocation2] sm:$0xff]  ;;  %p315_p2 = scmp.ne.s32.totalorder %s186_s18, %s314_s19  ;;  %p319_p3 = scmp.lt.s32.totalorder %s186_s18, %s186_s18 }
  0x2d   :  { %p320_p4 = scmp.lt.s32.totalorder %s314_s19, %s314_s19 }
  0x2f   :  { %240 = vmatpush3.bf16.msra.mxu0 %v239_v7  ;;  %p321_p5 = por %p320_p4, %p319_p3 }
  0x30   :  { %241 = vmatprep.subr.bf16.mxu0 %v370_v0 }
  0x31   :  { %p322_p6 = pnand %p321_p5, %p315_p2 }
  0x33   :  { %243 = vmatpush3.bf16.msra.mxu0 %v242_v10 }
  0x34   :  { %244 = vmatprep.subr.bf16.mxu0 %v370_v0 }
  0x37   :  { %246 = vmatpush3.bf16.msra.mxu0 %v245_v13 }
  0x38   :  { %247 = vmatprep.subr.bf16.mxu0 %v370_v0 }
  0x3b   :  { %249 = vmatpush3.bf16.msra.mxu0 %v248_v16 }
  0x3e   :  { %233 = vmatmul.mubr.msk.f32.vlgmr.msra.gmra.mrb[0].mxu0 %vm55_vm1, %v44_v17 }
 0x111   :  { %v125_v18 = vpop.f32.mrb[0].mxu0 }
 0x112   :  { %262 = vtanh.f32 %v125_v18  ;;  %v234_v19 = vpop.f32.mrb[1].mxu0  ;;  %v200_v22 = vmul.f32 -1.442695, %v125_v18 }
 0x114   :  { %264 = vpow2.f32 %v200_v22 }
 0x11c   :  { %v263_v20 = vpop.eup %262 }
 0x11d   :  { %143 = vrot.lane.b32.xlu0 %v263_v20, %s373_s15 }
 0x11e   :  { %v265_v23 = vpop.eup %264 }
 0x11f   :  { %v133_v24 = vadd.f32 1.0, %v265_v23 }
 0x121   :  { %138 = vrot.lane.b32.xlu0 %v129_v21, %s374_s16  ;;  %266 = vrcp.f32 %v133_v24 }
 0x12b   :  { %v267_v25 = vpop.eup %266 }
 0x18f   :  { %v144_v26 = vpop.permute.xlu0 %143 }
 0x190   :  { %v146_v27 = vmul.f32 %v267_v25, %v144_v26 }
 0x192   :  { %148 = vrot.lane.b32.xlu1 %v146_v27, %s374_s16 }
 0x193   :  { %v139_v28 = vpop.permute.xlu0 %138 }
 0x194   :  { %v141_v29 = vmul.f32 %v267_v25, %v139_v28 }
 0x204   :  { %v149_v30 = vpop.permute.xlu1 %148 }
 0x205   :  { %v151_v31 = vadd.f32 %v149_v30, %v141_v29 }
 0x207   :  { %268 = vtanh.f32 %v151_v31 }
 0x211   :  { %v269_v32 = vpop.eup %268 }
 0x212   :  { %154 = vrot.lane.b32.xlu1 %v269_v32, %s373_s15 }
 0x216   :  { %165 = vrot.lane.b32.xlu1 %v151_v31, %s375_s0 }
 0x284   :  { %v155_v33 = vpop.permute.xlu1 %154 }
 0x285   :  { %v157_v34 = vmul.f32 %v267_v25, %v155_v33 }
 0x287   :  { %159 = vrot.lane.b32.xlu0 %v157_v34, %s374_s16 }
 0x288   :  { %v166_v35 = vpop.permute.xlu1 %165 }
 0x289   :  { %168 = vst.msk [vmem:[#allocation8] sm:$0xff] %vm162_vm2, %v166_v35 }
 0x28a   :  { %325 = shalt.err (!%p322_p6)
}
 0x28b   :  { %s326_s22 = scalar_lea.hbm %s467_s4, 128 }
 0x28c   :  { %p327_p7 = scmp.ne.s32.totalorder %s467_s4, %s326_s22  ;;  %p330_p8 = scmp.lt.u32.totalorder %s326_s22, %s467_s4 }
 0x28e   :  { %p332_p9 = pnand %p330_p8, %p327_p7 }
 0x290   :  { %335 = shalt.err (!%p332_p9)
}
 0x291   :  { %188 = dma.vmem_to_hbm [thread:$0]  %s186_s18, 128, %s467_s4, [#allocation9]  }
 0x292   :  { %s377_s29 = smov [#allocation7]  }
 0x293   :  { %s175_s30 = sshll.u32 %s377_s29, 4  ;;  %s176_s30 = int_to_ptr.vmem [resolvable:$true] %s175_s30 }
 0x294   :  { %s336_s5 = scalar_lea.vmem %s176_s30, 128  ;;  %p341_p11 = scmp.lt.s32.totalorder %s176_s30, %s176_s30 }
 0x295   :  { %p337_p10 = scmp.ne.s32.totalorder %s176_s30, %s336_s5  ;;  %p342_p12 = scmp.lt.s32.totalorder %s336_s5, %s336_s5 }
 0x297   :  { %p343_p13 = por %p342_p12, %p341_p11 }
 0x299   :  { %p344_p0 = pnand %p343_p13, %p337_p10 }
 0x2f9   :  { %v160_v36 = vpop.permute.xlu0 %159 }
 0x2fa   :  { %163 = vst.msk [vmem:[#allocation7] sm:$0xff] %vm162_vm2, %v160_v36 }
 0x2fb   :  { %347 = shalt.err (!%p344_p0)
}
 0x2fc   :  { %s348_s8 = scalar_lea.hbm %s466_s3, 128 }
 0x2fd   :  { %p349_p1 = scmp.ne.s32.totalorder %s466_s3, %s348_s8  ;;  %p352_p2 = scmp.lt.u32.totalorder %s348_s8, %s466_s3 }
 0x2ff   :  { %p354_p3 = pnand %p352_p2, %p349_p1 }
 0x301   :  { %357 = shalt.err (!%p354_p3)
}
 0x302   :  { %178 = dma.vmem_to_hbm [thread:$0]  %s176_s30, 128, %s466_s3, [#allocation4]  }
 0x303   :  { %362 = dma.done.wait [#allocation4], 128  }
 0x304   :  { %363 = vsyncadd [#allocation4], 4294967168 }
 0x305   :  { %364 = dma.done.wait [#allocation9], 128  }
 0x306   :  { %365 = vsyncadd [#allocation9], 4294967168 }
 0x307   :  { %195 = vsyncpa [#allocation3], 1 }
 0x308   :  { %196 = vsyncpa [#allocation6], 1 }
 0x309   :  { %197 = vsyncpa [#allocation4], 1 }
 0x30a   :  { %198 = vsyncpa [#allocation9], 1 }

</bundles_post_ra>
